<compile_context>
chip_gen: v6e
topology: v6e:2x2x1
jax: 0.10.0
libtpu: 0.0.40
codegen_flags: <defaults>
</compile_context>

<pallas_src>
import functools

import jax
import jax.numpy as jnp
from jax import lax
from jax.experimental import pallas as pl
from jax.experimental.pallas import tpu as pltpu


_MASK_VALUE = -1e30  # finite large-negative mask (avoids exp(-inf - -inf) NaNs)


def _layernorm(x, scale, shift, eps=1e-5):
    # x: (T, D); scale/shift: (1, D) -- matches torch LayerNorm (unbiased=False)
    mean = jnp.mean(x, axis=-1, keepdims=True)
    var = jnp.mean((x - mean) ** 2, axis=-1, keepdims=True) + eps
    return scale * ((x - mean) / jnp.sqrt(var)) + shift


def _gelu_tanh(x):
    c = jnp.sqrt(jnp.float32(2.0 / jnp.pi))
    return x * 0.5 * (1.0 + jnp.tanh(c * (x + 0.044715 * x * x * x)))


def _split_heads(x2d, num_heads, head_width):
    # (T, H*hw) -> (H, T, hw): per-head lane slices stacked on a NEW leading
    # axis.  Only used in the pre-pass, once per token tile.
    parts = [x2d[:, h * head_width:(h + 1) * head_width] for h in range(num_heads)]
    return jnp.stack(parts, axis=0)


# --------------------------- pre-pass: LN1 + QKV ----------------------------
def qkv_projection_kernel(x_ref, ln1_s_ref, ln1_b_ref, wqkv_ref,
                          q_ref, k_ref, v_ref, *, num_heads):
    D = x_ref.shape[2]
    hw = D // num_heads
    bf16 = jnp.bfloat16
    h1 = _layernorm(x_ref[0], ln1_s_ref[...], ln1_b_ref[...])
    # fused Q|K|V projection; the 1/sqrt(hw) scale is already folded into wq.
    qkv = jnp.dot(h1.astype(bf16), wqkv_ref[...],
                  preferred_element_type=jnp.float32)            # (T, 3D)
    q_ref[0] = _split_heads(qkv[:, :D], num_heads, hw).astype(bf16)
    k_ref[0] = _split_heads(qkv[:, D:2 * D], num_heads, hw).astype(bf16)
    v_ref[0] = _split_heads(qkv[:, 2 * D:], num_heads, hw).astype(bf16)


# -------------------- attention (triangular grid) + epilogue -----------------
def attention_block_kernel(
    qi_tbl, ki_tbl,                                   # scalar-prefetch (SMEM)
    q_ref, k_ref, v_ref, xq_ref,
    wo_ref, bo_ref, ln2_s_ref, ln2_b_ref,
    w1_ref, b1_ref, w2_ref, b2_ref,
    o_ref,
    m_scr, l_scr, acc_scr,
    *,
    num_heads: int,
):
    t = pl.program_id(1)
    qi = qi_tbl[t]          # q-tile index of this triangular step
    ki = ki_tbl[t]          # kv-tile index of this triangular step (ki <= qi)
    TQ = q_ref.shape[2]
    bf16 = jnp.bfloat16

    # ---- new q-tile segment: reset flash-softmax state ----
    @pl.when(ki == 0)
    def _init():
        m_scr[...] = jnp.full(m_scr.shape, _MASK_VALUE, m_scr.dtype)
        l_scr[...] = jnp.zeros(l_scr.shape, l_scr.dtype)
        acc_scr[...] = jnp.zeros(acc_scr.shape, acc_scr.dtype)

    def scores():
        # batched-head scores; q already carries the 1/sqrt(hw) scale
        return jnp.einsum('hqd,hkd->hqk', q_ref[0], k_ref[0],
                          preferred_element_type=jnp.float32)    # (H, TQ, TK)

    def flash_update(s):
        m_prev = m_scr[...]
        m_new = jnp.maximum(m_prev, jnp.max(s, axis=-1, keepdims=True))
        alpha = jnp.exp(m_prev - m_new)
        p = jnp.exp(s - m_new)
        l_scr[...] = alpha * l_scr[...] + jnp.sum(p, axis=-1, keepdims=True)
        acc_scr[...] = alpha * acc_scr[...] + jnp.einsum(
            'hqk,hkd->hqd', p.astype(bf16), v_ref[0],
            preferred_element_type=jnp.float32)
        m_scr[...] = m_new

    # ---- off-diagonal kv tiles: fully visible, no mask work ----
    @pl.when(ki < qi)
    def _off_diag():
        flash_update(scores())

    # ---- diagonal kv tile: masked update, then finish the whole block ----
    @pl.when(ki == qi)
    def _diag_and_epilogue():
        s = scores()
        # within-tile causal mask (row/col offsets cancel since ki == qi)
        row = lax.broadcasted_iota(jnp.int32, (TQ, TQ), 0)
        col = lax.broadcasted_iota(jnp.int32, (TQ, TQ), 1)
        s = s + jnp.where(col > row,
                          jnp.float32(_MASK_VALUE), jnp.float32(0.0))[None]
        flash_update(s)

        inv_l = pl.reciprocal(l_scr[...], approx=True)           # (H, TQ, 1)
        ctx = (acc_scr[...] * inv_l).astype(bf16)                # (H, TQ, hw)
        # lane-concat heads back to (TQ, D) once, then ONE K=D matmul with wo
        ctx2d = jnp.concatenate([ctx[h] for h in range(num_heads)], axis=-1)
        attn = jnp.dot(ctx2d, wo_ref[...],
                       preferred_element_type=jnp.float32) + bo_ref[...]
        # TODO(synk): dropout is identity here (inference); training-mode dropout needs RNG.
        x1 = attn + xq_ref[0]                                    # residual 1

        h2 = _layernorm(x1, ln2_s_ref[...], ln2_b_ref[...])
        ff = jnp.dot(h2.astype(bf16), w1_ref[...],
                     preferred_element_type=jnp.float32) + b1_ref[...]
        ff = _gelu_tanh(ff)
        ff = jnp.dot(ff.astype(bf16), w2_ref[...],
                     preferred_element_type=jnp.float32) + b2_ref[...]
        o_ref[0] = (ff + x1).astype(o_ref.dtype)                 # residual 2


def _pick_seq_tile(S, target=256):
    # On v6e (128 MiB VMEM) target=512 with vmem_limit ~96 MiB is better;
    # on v5e keep 128-256.
    target = max(8, (target // 8) * 8)
    if S <= target:
        return S
    for t in range(target, 0, -8):
        if S % t == 0:
            return t
    return S


def transformer_block(x, params, num_heads, *, seq_tile=None,
                      vmem_limit_bytes=56 * 1024 * 1024,
                      single_buffer_weights=True):
    B, S, D = x.shape
    assert D % num_heads == 0, "num_heads must divide emb_dim"
    hw = D // num_heads
    Dff = params["w1"].shape[1]
    scale = 1.0 / (hw ** 0.5)

    T = seq_tile if seq_tile is not None else _pick_seq_tile(S)
    assert S % T == 0 and (T % 8 == 0 or T == S)
    n_tiles = S // T

    bf16 = jnp.bfloat16
    # fused Q|K|V weight, with the attention scale folded into wq (exact)
    wqkv = jnp.concatenate(
        [params["wq"] * scale, params["wk"], params["wv"]], axis=1).astype(bf16)  # (D, 3D)
    wo = params["wo"].astype(bf16)                                                 # (D, D)
    w1 = params["w1"].astype(bf16)
    w2 = params["w2"].astype(bf16)

    # flattened lower-triangular step tables: (qi, ki) for ki <= qi
    qi_list, ki_list = [], []
    for q_idx in range(n_tiles):
        for k_idx in range(q_idx + 1):
            qi_list.append(q_idx)
            ki_list.append(k_idx)
    qi_of = jnp.asarray(qi_list, jnp.int32)
    ki_of = jnp.asarray(ki_list, jnp.int32)
    n_steps = len(qi_list)

    def run(use_single_buffer):
        def wspec(shape, idx_map):
            # Constant weights: single-buffer them (double-buffering a block
            # whose index never changes is pure VMEM waste, esp. on v7x).
            if use_single_buffer:
                return pl.BlockSpec(shape, idx_map, pipeline_mode=pl.Buffered(1))
            return pl.BlockSpec(shape, idx_map)

        # -------- pre-pass: LN1 + fused QKV projection, once per token tile --------
        qkv_call = pl.pallas_call(
            functools.partial(qkv_projection_kernel, num_heads=num_heads),
            out_shape=[jax.ShapeDtypeStruct((B, num_heads, S, hw), bf16)] * 3,
            grid_spec=pltpu.PrefetchScalarGridSpec(
                num_scalar_prefetch=0,
                grid=(B, n_tiles),
                in_specs=[
                    pl.BlockSpec((1, T, D), lambda b, i: (b, i, 0)),
                    wspec((1, D), lambda b, i: (0, 0)),
                    wspec((1, D), lambda b, i: (0, 0)),
                    wspec((D, 3 * D), lambda b, i: (0, 0)),
                ],
                out_specs=[
                    pl.BlockSpec((1, num_heads, T, hw), lambda b, i: (b, 0, i, 0)),
                    pl.BlockSpec((1, num_heads, T, hw), lambda b, i: (b, 0, i, 0)),
                    pl.BlockSpec((1, num_heads, T, hw), lambda b, i: (b, 0, i, 0)),
                ],
            ),
            compiler_params=pltpu.CompilerParams(
                dimension_semantics=("parallel", "parallel"),
                vmem_limit_bytes=vmem_limit_bytes),
        )
        q, k, v = qkv_call(x, params["ln1_scale"], params["ln1_shift"], wqkv)

        # -------- attention on the flattened triangular grid + fused epilogue --------
        attn_call = pl.pallas_call(
            functools.partial(attention_block_kernel, num_heads=num_heads),
            out_shape=jax.ShapeDtypeStruct((B, S, D), x.dtype),
            grid_spec=pltpu.PrefetchScalarGridSpec(
                num_scalar_prefetch=2,          # qi_of, ki_of lookup tables
                grid=(B, n_steps),
                in_specs=[
                    # Q tile (bf16, head-major): constant within a q segment
                    pl.BlockSpec((1, num_heads, T, hw),
                                 lambda b, t, qt, kt: (b, 0, qt[t], 0)),
                    # K / V tiles (bf16, head-major): the repeated kv stream
                    pl.BlockSpec((1, num_heads, T, hw),
                                 lambda b, t, qt, kt: (b, 0, kt[t], 0)),
                    pl.BlockSpec((1, num_heads, T, hw),
                                 lambda b, t, qt, kt: (b, 0, kt[t], 0)),
                    # original x rows of the q tile (f32) for residual 1
                    pl.BlockSpec((1, T, D), lambda b, t, qt, kt: (b, qt[t], 0)),
                    wspec((D, D), lambda b, t, qt, kt: (0, 0)),       # wo
                    wspec((1, D), lambda b, t, qt, kt: (0, 0)),       # bo
                    wspec((1, D), lambda b, t, qt, kt: (0, 0)),       # ln2 scale
                    wspec((1, D), lambda b, t, qt, kt: (0, 0)),       # ln2 shift
                    wspec((D, Dff), lambda b, t, qt, kt: (0, 0)),     # w1
                    wspec((1, Dff), lambda b, t, qt, kt: (0, 0)),     # b1
                    wspec((Dff, D), lambda b, t, qt, kt: (0, 0)),     # w2
                    wspec((1, D), lambda b, t, qt, kt: (0, 0)),       # b2
                ],
                out_specs=pl.BlockSpec((1, T, D), lambda b, t, qt, kt: (b, qt[t], 0)),
                scratch_shapes=[
                    pltpu.VMEM((num_heads, T, 1), jnp.float32),   # running max
                    pltpu.VMEM((num_heads, T, 1), jnp.float32),   # running denom
                    pltpu.VMEM((num_heads, T, hw), jnp.float32),  # unnormalized ctx
                ],
            ),
            compiler_params=pltpu.CompilerParams(
                # Batch splits across TensorCores (balanced since triangular
                # steps are uniform per batch); the step axis carries the
                # online-softmax state -> "arbitrary".
                dimension_semantics=("parallel", "arbitrary"),
                vmem_limit_bytes=vmem_limit_bytes),
        )
        return attn_call(
            qi_of, ki_of, q, k, v, x,
            wo, params["bo"], params["ln2_scale"], params["ln2_shift"],
            w1, params["b1"], w2, params["b2"])

    if single_buffer_weights:
        try:
            return run(True)
        except Exception:
            # pipeline_mode=pl.Buffered(1) not supported by this jax build;
            # fall back to default (double-buffered) weight blocks.
            return run(False)
    return run(False)


# ------------------------- pure-JAX reference (f32) -------------------------
def reference_block(x, params, num_heads):
    def ln(x, s, b):
        m = jnp.mean(x, axis=-1, keepdims=True)
        v = jnp.mean((x - m) ** 2, axis=-1, keepdims=True) + 1e-5
        return s * ((x - m) / jnp.sqrt(v)) + b

    B, S, D = x.shape
    hw = D // num_heads
    h1 = ln(x, params["ln1_scale"], params["ln1_shift"])
    q = h1 @ params["wq"]
    k = h1 @ params["wk"]
    v = h1 @ params["wv"]
    q = q.reshape(B, S, num_heads, hw).transpose(0, 2, 1, 3)
    k = k.reshape(B, S, num_heads, hw).transpose(0, 2, 1, 3)
    v = v.reshape(B, S, num_heads, hw).transpose(0, 2, 1, 3)
    scores = jnp.einsum("bhqd,bhkd->bhqk", q, k) / (hw ** 0.5)
    mask = jnp.triu(jnp.ones((S, S), dtype=bool), k=1)
    scores = jnp.where(mask, -jnp.inf, scores)
    w = jax.nn.softmax(scores, axis=-1)
    ctx = jnp.einsum("bhqk,bhkd->bhqd", w, v).transpose(0, 2, 1, 3).reshape(B, S, D)
    attn = ctx @ params["wo"] + params["bo"]
    x1 = attn + x
    h2 = ln(x1, params["ln2_scale"], params["ln2_shift"])
    c = jnp.sqrt(jnp.float32(2.0 / jnp.pi))
    ff = h2 @ params["w1"] + params["b1"]
    ff = ff * 0.5 * (1.0 + jnp.tanh(c * (ff + 0.044715 * ff ** 3)))
    ff = ff @ params["w2"] + params["b2"]
    return ff + x1


if __name__ == "__main__":
    # Small GPT config: emb_dim=32, n_heads=4, batch=2, seq=16.
    # seq_tile=8 -> 2 tiles -> 3 triangular steps per batch, so the pre-pass,
    # init / unmasked / masked+epilogue paths and the scalar-prefetch tables
    # are all exercised.
    B, S, D, H = 2, 16, 32, 4
    Dff = 4 * D

    key = jax.random.PRNGKey(0)
    ks = jax.random.split(key, 8)
    params = {
        "ln1_scale": jnp.ones((1, D), jnp.float32),
        "ln1_shift": jnp.zeros((1, D), jnp.float32),
        "wq": jax.random.normal(ks[0], (D, D), jnp.float32) * 0.05,
        "wk": jax.random.normal(ks[1], (D, D), jnp.float32) * 0.05,
        "wv": jax.random.normal(ks[2], (D, D), jnp.float32) * 0.05,
        "wo": jax.random.normal(ks[3], (D, D), jnp.float32) * 0.05,
        "bo": jax.random.normal(ks[4], (1, D), jnp.float32) * 0.01,
        "ln2_scale": jnp.ones((1, D), jnp.float32),
        "ln2_shift": jnp.zeros((1, D), jnp.float32),
        "w1": jax.random.normal(ks[5], (D, Dff), jnp.float32) * 0.05,
        "b1": jnp.zeros((1, Dff), jnp.float32),
        "w2": jax.random.normal(ks[6], (Dff, D), jnp.float32) * 0.05,
        "b2": jnp.zeros((1, D), jnp.float32),
    }
    x = jax.random.normal(ks[7], (B, S, D), jnp.float32)

    out = transformer_block(x, params, num_heads=H, seq_tile=8)
    out = jax.block_until_ready(out)

    ref = reference_block(x, params, num_heads=H)
    assert out.shape == (B, S, D)
    err = float(jnp.max(jnp.abs(out - ref)))
    # bf16 MXU operands (f32 accumulation) vs f32 reference -> loose tolerance.
    assert jnp.allclose(out, ref, atol=3e-2, rtol=3e-2), (
        f"mismatch vs reference (max abs err {err})")

    print("KERNEL_OK")
</pallas_src>

<mosaic_0001>
module attributes {stable_mosaic.version = 11 : i64} {
  func.func @qkv_projection_kernel(%arg0: i32, %arg1: i32, %arg2: memref<1x8x32xf32, #tpu.memory_space<vmem>>, %arg3: memref<1x32xf32, #tpu.memory_space<vmem>>, %arg4: memref<1x32xf32, #tpu.memory_space<vmem>>, %arg5: memref<32x96xbf16, #tpu.memory_space<vmem>>, %arg6: memref<1x4x8x8xbf16, #tpu.memory_space<vmem>>, %arg7: memref<1x4x8x8xbf16, #tpu.memory_space<vmem>>, %arg8: memref<1x4x8x8xbf16, #tpu.memory_space<vmem>>) attributes {dimension_semantics = [#tpu.dimension_semantics<parallel>, #tpu.dimension_semantics<parallel>], iteration_bounds = array<i64: 2, 2>, scalar_prefetch = 0 : i64, scratch_operands = 0 : i64, tpu.core_type = #tpu.core_type<tc>, window_params = [{transform_indices = @transform_0, window_bounds = array<i64: 1, 8, 32>}, {pipeline_mode = #tpu.pipeline_mode<synchronous>, transform_indices = @transform_1, window_bounds = array<i64: 1, 32>}, {pipeline_mode = #tpu.pipeline_mode<synchronous>, transform_indices = @transform_2, window_bounds = array<i64: 1, 32>}, {pipeline_mode = #tpu.pipeline_mode<synchronous>, transform_indices = @transform_3, window_bounds = array<i64: 32, 96>}, {transform_indices = @transform_4, window_bounds = array<i64: 1, 4, 8, 8>}, {transform_indices = @transform_5, window_bounds = array<i64: 1, 4, 8, 8>}, {transform_indices = @transform_6, window_bounds = array<i64: 1, 4, 8, 8>}]} {
    %c0 = arith.constant 0 : index
    %c0_0 = arith.constant 0 : index
    %c0_1 = arith.constant 0 : index
    %0 = vector.load %arg2[%c0, %c0_0, %c0_1] : memref<1x8x32xf32, #tpu.memory_space<vmem>>, vector<1x8x32xf32>
    %1 = vector.shape_cast %0 : vector<1x8x32xf32> to vector<8x32xf32>
    %c0_2 = arith.constant 0 : index
    %c0_3 = arith.constant 0 : index
    %2 = vector.load %arg3[%c0_2, %c0_3] : memref<1x32xf32, #tpu.memory_space<vmem>>, vector<1x32xf32>
    %c0_4 = arith.constant 0 : index
    %c0_5 = arith.constant 0 : index
    %3 = vector.load %arg4[%c0_4, %c0_5] : memref<1x32xf32, #tpu.memory_space<vmem>>, vector<1x32xf32>
    %cst = arith.constant dense<0.000000e+00> : vector<8xf32>
    %4 = vector.multi_reduction <add>, %1, %cst [1] : vector<8x32xf32> to vector<8xf32>
    %5 = vector.shape_cast %4 : vector<8xf32> to vector<8x1xf32>
    %cst_6 = arith.constant 3.200000e+01 : f32
    %6 = vector.broadcast %cst_6 : f32 to vector<8x1xf32>
    %7 = arith.divf %5, %6 : vector<8x1xf32>
    %8 = vector.broadcast %7 : vector<8x1xf32> to vector<8x32xf32>
    %9 = arith.subf %1, %8 : vector<8x32xf32>
    %10 = arith.mulf %9, %9 : vector<8x32xf32>
    %cst_7 = arith.constant dense<0.000000e+00> : vector<8xf32>
    %11 = vector.multi_reduction <add>, %10, %cst_7 [1] : vector<8x32xf32> to vector<8xf32>
    %12 = vector.shape_cast %11 : vector<8xf32> to vector<8x1xf32>
    %cst_8 = arith.constant 3.200000e+01 : f32
    %13 = vector.broadcast %cst_8 : f32 to vector<8x1xf32>
    %14 = arith.divf %12, %13 : vector<8x1xf32>
    %cst_9 = arith.constant 9.99999974E-6 : f32
    %15 = vector.broadcast %cst_9 : f32 to vector<8x1xf32>
    %16 = arith.addf %14, %15 : vector<8x1xf32>
    %17 = vector.broadcast %7 : vector<8x1xf32> to vector<8x32xf32>
    %18 = arith.subf %1, %17 : vector<8x32xf32>
    %19 = math.sqrt %16 : vector<8x1xf32>
    %20 = vector.broadcast %19 : vector<8x1xf32> to vector<8x32xf32>
    %21 = arith.divf %18, %20 : vector<8x32xf32>
    %22 = vector.broadcast %2 : vector<1x32xf32> to vector<8x32xf32>
    %23 = arith.mulf %22, %21 : vector<8x32xf32>
    %24 = vector.broadcast %3 : vector<1x32xf32> to vector<8x32xf32>
    %25 = arith.addf %23, %24 : vector<8x32xf32>
    %26 = arith.truncf %25 : vector<8x32xf32> to vector<8x32xbf16>
    %c0_10 = arith.constant 0 : index
    %c0_11 = arith.constant 0 : index
    %27 = vector.load %arg5[%c0_10, %c0_11] : memref<32x96xbf16, #tpu.memory_space<vmem>>, vector<32x96xbf16>
    %cst_12 = arith.constant dense<0.000000e+00> : vector<8x96xf32>
    %28 = tpu.matmul %26, %27, %cst_12 {dimension_numbers = #tpu.dot_dimension_numbers<[1], [0], [0], [1], [0, 0, 1, 1], [], []>} : vector<8x32xbf16>, vector<32x96xbf16>, vector<8x96xf32> -> vector<8x96xf32>
    %29 = vector.extract_strided_slice %28 {offsets = [0, 0], sizes = [8, 32], strides = [1, 1]} : vector<8x96xf32> to vector<8x32xf32>
    %30 = vector.extract_strided_slice %29 {offsets = [0, 0], sizes = [8, 8], strides = [1, 1]} : vector<8x32xf32> to vector<8x8xf32>
    %31 = vector.extract_strided_slice %29 {offsets = [0, 8], sizes = [8, 8], strides = [1, 1]} : vector<8x32xf32> to vector<8x8xf32>
    %32 = vector.extract_strided_slice %29 {offsets = [0, 16], sizes = [8, 8], strides = [1, 1]} : vector<8x32xf32> to vector<8x8xf32>
    %33 = vector.extract_strided_slice %29 {offsets = [0, 24], sizes = [8, 8], strides = [1, 1]} : vector<8x32xf32> to vector<8x8xf32>
    %34 = vector.shape_cast %30 : vector<8x8xf32> to vector<1x8x8xf32>
    %35 = vector.shape_cast %31 : vector<8x8xf32> to vector<1x8x8xf32>
    %36 = vector.shape_cast %32 : vector<8x8xf32> to vector<1x8x8xf32>
    %37 = vector.shape_cast %33 : vector<8x8xf32> to vector<1x8x8xf32>
    %38 = tpu.concatenate %34, %35, %36, %37 in 0 : vector<1x8x8xf32>, vector<1x8x8xf32>, vector<1x8x8xf32>, vector<1x8x8xf32> -> vector<4x8x8xf32>
    %39 = arith.truncf %38 : vector<4x8x8xf32> to vector<4x8x8xbf16>
    %c0_13 = arith.constant 0 : index
    %c0_14 = arith.constant 0 : index
    %c0_15 = arith.constant 0 : index
    %c0_16 = arith.constant 0 : index
    %40 = vector.load %arg6[%c0_13, %c0_14, %c0_15, %c0_16] : memref<1x4x8x8xbf16, #tpu.memory_space<vmem>>, vector<1x4x8x8xbf16>
    %41 = vector.shape_cast %40 : vector<1x4x8x8xbf16> to vector<4x8x8xbf16>
    %42 = vector.shape_cast %39 : vector<4x8x8xbf16> to vector<1x4x8x8xbf16>
    tpu.vector_store %arg6[%c0_13, %c0_14, %c0_15, %c0_16], %42 {strides = array<i32>} : memref<1x4x8x8xbf16, #tpu.memory_space<vmem>>, vector<1x4x8x8xbf16>,
    %43 = vector.extract_strided_slice %28 {offsets = [0, 32], sizes = [8, 32], strides = [1, 1]} : vector<8x96xf32> to vector<8x32xf32>
    %44 = vector.extract_strided_slice %43 {offsets = [0, 0], sizes = [8, 8], strides = [1, 1]} : vector<8x32xf32> to vector<8x8xf32>
    %45 = vector.extract_strided_slice %43 {offsets = [0, 8], sizes = [8, 8], strides = [1, 1]} : vector<8x32xf32> to vector<8x8xf32>
    %46 = vector.extract_strided_slice %43 {offsets = [0, 16], sizes = [8, 8], strides = [1, 1]} : vector<8x32xf32> to vector<8x8xf32>
    %47 = vector.extract_strided_slice %43 {offsets = [0, 24], sizes = [8, 8], strides = [1, 1]} : vector<8x32xf32> to vector<8x8xf32>
    %48 = vector.shape_cast %44 : vector<8x8xf32> to vector<1x8x8xf32>
    %49 = vector.shape_cast %45 : vector<8x8xf32> to vector<1x8x8xf32>
    %50 = vector.shape_cast %46 : vector<8x8xf32> to vector<1x8x8xf32>
    %51 = vector.shape_cast %47 : vector<8x8xf32> to vector<1x8x8xf32>
    %52 = tpu.concatenate %48, %49, %50, %51 in 0 : vector<1x8x8xf32>, vector<1x8x8xf32>, vector<1x8x8xf32>, vector<1x8x8xf32> -> vector<4x8x8xf32>
    %53 = arith.truncf %52 : vector<4x8x8xf32> to vector<4x8x8xbf16>
    %c0_17 = arith.constant 0 : index
    %c0_18 = arith.constant 0 : index
    %c0_19 = arith.constant 0 : index
    %c0_20 = arith.constant 0 : index
    %54 = vector.load %arg7[%c0_17, %c0_18, %c0_19, %c0_20] : memref<1x4x8x8xbf16, #tpu.memory_space<vmem>>, vector<1x4x8x8xbf16>
    %55 = vector.shape_cast %54 : vector<1x4x8x8xbf16> to vector<4x8x8xbf16>
    %56 = vector.shape_cast %53 : vector<4x8x8xbf16> to vector<1x4x8x8xbf16>
    tpu.vector_store %arg7[%c0_17, %c0_18, %c0_19, %c0_20], %56 {strides = array<i32>} : memref<1x4x8x8xbf16, #tpu.memory_space<vmem>>, vector<1x4x8x8xbf16>,
    %57 = vector.extract_strided_slice %28 {offsets = [0, 64], sizes = [8, 32], strides = [1, 1]} : vector<8x96xf32> to vector<8x32xf32>
    %58 = vector.extract_strided_slice %57 {offsets = [0, 0], sizes = [8, 8], strides = [1, 1]} : vector<8x32xf32> to vector<8x8xf32>
    %59 = vector.extract_strided_slice %57 {offsets = [0, 8], sizes = [8, 8], strides = [1, 1]} : vector<8x32xf32> to vector<8x8xf32>
    %60 = vector.extract_strided_slice %57 {offsets = [0, 16], sizes = [8, 8], strides = [1, 1]} : vector<8x32xf32> to vector<8x8xf32>
    %61 = vector.extract_strided_slice %57 {offsets = [0, 24], sizes = [8, 8], strides = [1, 1]} : vector<8x32xf32> to vector<8x8xf32>
    %62 = vector.shape_cast %58 : vector<8x8xf32> to vector<1x8x8xf32>
    %63 = vector.shape_cast %59 : vector<8x8xf32> to vector<1x8x8xf32>
    %64 = vector.shape_cast %60 : vector<8x8xf32> to vector<1x8x8xf32>
    %65 = vector.shape_cast %61 : vector<8x8xf32> to vector<1x8x8xf32>
    %66 = tpu.concatenate %62, %63, %64, %65 in 0 : vector<1x8x8xf32>, vector<1x8x8xf32>, vector<1x8x8xf32>, vector<1x8x8xf32> -> vector<4x8x8xf32>
    %67 = arith.truncf %66 : vector<4x8x8xf32> to vector<4x8x8xbf16>
    %c0_21 = arith.constant 0 : index
    %c0_22 = arith.constant 0 : index
    %c0_23 = arith.constant 0 : index
    %c0_24 = arith.constant 0 : index
    %68 = vector.load %arg8[%c0_21, %c0_22, %c0_23, %c0_24] : memref<1x4x8x8xbf16, #tpu.memory_space<vmem>>, vector<1x4x8x8xbf16>
    %69 = vector.shape_cast %68 : vector<1x4x8x8xbf16> to vector<4x8x8xbf16>
    %70 = vector.shape_cast %67 : vector<4x8x8xbf16> to vector<1x4x8x8xbf16>
    tpu.vector_store %arg8[%c0_21, %c0_22, %c0_23, %c0_24], %70 {strides = array<i32>} : memref<1x4x8x8xbf16, #tpu.memory_space<vmem>>, vector<1x4x8x8xbf16>,
    return
  }
  func.func @transform_0(%arg0: i32, %arg1: i32) -> (i32, i32, i32) {
    %c0_i32 = arith.constant 0 : i32
    %c0_i32_0 = arith.constant 0 : i32
    return %arg0, %arg1, %c0_i32 : i32, i32, i32
  }
  func.func @transform_1(%arg0: i32, %arg1: i32) -> (i32, i32) {
    %c0_i32 = arith.constant 0 : i32
    %c0_i32_0 = arith.constant 0 : i32
    %c0_i32_1 = arith.constant 0 : i32
    return %c0_i32, %c0_i32_0 : i32, i32
  }
  func.func @transform_2(%arg0: i32, %arg1: i32) -> (i32, i32) {
    %c0_i32 = arith.constant 0 : i32
    %c0_i32_0 = arith.constant 0 : i32
    %c0_i32_1 = arith.constant 0 : i32
    return %c0_i32, %c0_i32_0 : i32, i32
  }
  func.func @transform_3(%arg0: i32, %arg1: i32) -> (i32, i32) {
    %c0_i32 = arith.constant 0 : i32
    %c0_i32_0 = arith.constant 0 : i32
    %c0_i32_1 = arith.constant 0 : i32
    return %c0_i32, %c0_i32_0 : i32, i32
  }
  func.func @transform_4(%arg0: i32, %arg1: i32) -> (i32, i32, i32, i32) {
    %c0_i32 = arith.constant 0 : i32
    %c0_i32_0 = arith.constant 0 : i32
    %c0_i32_1 = arith.constant 0 : i32
    return %arg0, %c0_i32, %arg1, %c0_i32_0 : i32, i32, i32, i32
  }
  func.func @transform_5(%arg0: i32, %arg1: i32) -> (i32, i32, i32, i32) {
    %c0_i32 = arith.constant 0 : i32
    %c0_i32_0 = arith.constant 0 : i32
    %c0_i32_1 = arith.constant 0 : i32
    return %arg0, %c0_i32, %arg1, %c0_i32_0 : i32, i32, i32, i32
  }
  func.func @transform_6(%arg0: i32, %arg1: i32) -> (i32, i32, i32, i32) {
    %c0_i32 = arith.constant 0 : i32
    %c0_i32_0 = arith.constant 0 : i32
    %c0_i32_1 = arith.constant 0 : i32
    return %arg0, %c0_i32, %arg1, %c0_i32_0 : i32, i32, i32, i32
  }
}

module attributes {stable_mosaic.version = 11 : i64} {
  func.func @qkv_projection_kernel(%arg0: i32, %arg1: i32, %arg2: memref<1x8x32xf32, #tpu.memory_space<vmem>>, %arg3: memref<1x32xf32, #tpu.memory_space<vmem>>, %arg4: memref<1x32xf32, #tpu.memory_space<vmem>>, %arg5: memref<32x96xbf16, #tpu.memory_space<vmem>>, %arg6: memref<1x4x8x8xbf16, #tpu.memory_space<vmem>>, %arg7: memref<1x4x8x8xbf16, #tpu.memory_space<vmem>>, %arg8: memref<1x4x8x8xbf16, #tpu.memory_space<vmem>>) attributes {dimension_semantics = [#tpu.dimension_semantics<parallel>, #tpu.dimension_semantics<parallel>], iteration_bounds = array<i64: 2, 2>, scalar_prefetch = 0 : i64, scratch_operands = 0 : i64, tpu.core_type = #tpu.core_type<tc>, window_params = [{transform_indices = @transform_0, window_bounds = array<i64: 1, 8, 32>}, {pipeline_mode = #tpu.pipeline_mode<synchronous>, transform_indices = @transform_1, window_bounds = array<i64: 1, 32>}, {pipeline_mode = #tpu.pipeline_mode<synchronous>, transform_indices = @transform_2, window_bounds = array<i64: 1, 32>}, {pipeline_mode = #tpu.pipeline_mode<synchronous>, transform_indices = @transform_3, window_bounds = array<i64: 32, 96>}, {transform_indices = @transform_4, window_bounds = array<i64: 1, 4, 8, 8>}, {transform_indices = @transform_5, window_bounds = array<i64: 1, 4, 8, 8>}, {transform_indices = @transform_6, window_bounds = array<i64: 1, 4, 8, 8>}]} {
    %c0 = arith.constant 0 : index
    %c0_0 = arith.constant 0 : index
    %c0_1 = arith.constant 0 : index
    %0 = vector.load %arg2[%c0, %c0_0, %c0_1] : memref<1x8x32xf32, #tpu.memory_space<vmem>>, vector<1x8x32xf32>
    %1 = vector.shape_cast %0 : vector<1x8x32xf32> to vector<8x32xf32>
    %c0_2 = arith.constant 0 : index
    %c0_3 = arith.constant 0 : index
    %2 = vector.load %arg3[%c0_2, %c0_3] : memref<1x32xf32, #tpu.memory_space<vmem>>, vector<1x32xf32>
    %c0_4 = arith.constant 0 : index
    %c0_5 = arith.constant 0 : index
    %3 = vector.load %arg4[%c0_4, %c0_5] : memref<1x32xf32, #tpu.memory_space<vmem>>, vector<1x32xf32>
    %cst = arith.constant dense<0.000000e+00> : vector<8xf32>
    %4 = vector.multi_reduction <add>, %1, %cst [1] : vector<8x32xf32> to vector<8xf32>
    %5 = vector.shape_cast %4 : vector<8xf32> to vector<8x1xf32>
    %cst_6 = arith.constant 3.200000e+01 : f32
    %6 = vector.broadcast %cst_6 : f32 to vector<8x1xf32>
    %7 = arith.divf %5, %6 : vector<8x1xf32>
    %8 = vector.broadcast %7 : vector<8x1xf32> to vector<8x32xf32>
    %9 = arith.subf %1, %8 : vector<8x32xf32>
    %10 = arith.mulf %9, %9 : vector<8x32xf32>
    %cst_7 = arith.constant dense<0.000000e+00> : vector<8xf32>
    %11 = vector.multi_reduction <add>, %10, %cst_7 [1] : vector<8x32xf32> to vector<8xf32>
    %12 = vector.shape_cast %11 : vector<8xf32> to vector<8x1xf32>
    %cst_8 = arith.constant 3.200000e+01 : f32
    %13 = vector.broadcast %cst_8 : f32 to vector<8x1xf32>
    %14 = arith.divf %12, %13 : vector<8x1xf32>
    %cst_9 = arith.constant 9.99999974E-6 : f32
    %15 = vector.broadcast %cst_9 : f32 to vector<8x1xf32>
    %16 = arith.addf %14, %15 : vector<8x1xf32>
    %17 = vector.broadcast %7 : vector<8x1xf32> to vector<8x32xf32>
    %18 = arith.subf %1, %17 : vector<8x32xf32>
    %19 = math.sqrt %16 : vector<8x1xf32>
    %20 = vector.broadcast %19 : vector<8x1xf32> to vector<8x32xf32>
    %21 = arith.divf %18, %20 : vector<8x32xf32>
    %22 = vector.broadcast %2 : vector<1x32xf32> to vector<8x32xf32>
    %23 = arith.mulf %22, %21 : vector<8x32xf32>
    %24 = vector.broadcast %3 : vector<1x32xf32> to vector<8x32xf32>
    %25 = arith.addf %23, %24 : vector<8x32xf32>
    %26 = arith.truncf %25 : vector<8x32xf32> to vector<8x32xbf16>
    %c0_10 = arith.constant 0 : index
    %c0_11 = arith.constant 0 : index
    %27 = vector.load %arg5[%c0_10, %c0_11] : memref<32x96xbf16, #tpu.memory_space<vmem>>, vector<32x96xbf16>
    %cst_12 = arith.constant dense<0.000000e+00> : vector<8x96xf32>
    %28 = tpu.matmul %26, %27, %cst_12 {dimension_numbers = #tpu.dot_dimension_numbers<[1], [0], [0], [1], [0, 0, 1, 1], [], []>} : vector<8x32xbf16>, vector<32x96xbf16>, vector<8x96xf32> -> vector<8x96xf32>
    %29 = vector.extract_strided_slice %28 {offsets = [0, 0], sizes = [8, 32], strides = [1, 1]} : vector<8x96xf32> to vector<8x32xf32>
    %30 = vector.extract_strided_slice %29 {offsets = [0, 0], sizes = [8, 8], strides = [1, 1]} : vector<8x32xf32> to vector<8x8xf32>
    %31 = vector.extract_strided_slice %29 {offsets = [0, 8], sizes = [8, 8], strides = [1, 1]} : vector<8x32xf32> to vector<8x8xf32>
    %32 = vector.extract_strided_slice %29 {offsets = [0, 16], sizes = [8, 8], strides = [1, 1]} : vector<8x32xf32> to vector<8x8xf32>
    %33 = vector.extract_strided_slice %29 {offsets = [0, 24], sizes = [8, 8], strides = [1, 1]} : vector<8x32xf32> to vector<8x8xf32>
    %34 = vector.shape_cast %30 : vector<8x8xf32> to vector<1x8x8xf32>
    %35 = vector.shape_cast %31 : vector<8x8xf32> to vector<1x8x8xf32>
    %36 = vector.shape_cast %32 : vector<8x8xf32> to vector<1x8x8xf32>
    %37 = vector.shape_cast %33 : vector<8x8xf32> to vector<1x8x8xf32>
    %38 = tpu.concatenate %34, %35, %36, %37 in 0 : vector<1x8x8xf32>, vector<1x8x8xf32>, vector<1x8x8xf32>, vector<1x8x8xf32> -> vector<4x8x8xf32>
    %39 = arith.truncf %38 : vector<4x8x8xf32> to vector<4x8x8xbf16>
    %c0_13 = arith.constant 0 : index
    %c0_14 = arith.constant 0 : index
    %c0_15 = arith.constant 0 : index
    %c0_16 = arith.constant 0 : index
    %40 = vector.load %arg6[%c0_13, %c0_14, %c0_15, %c0_16] : memref<1x4x8x8xbf16, #tpu.memory_space<vmem>>, vector<1x4x8x8xbf16>
    %41 = vector.shape_cast %40 : vector<1x4x8x8xbf16> to vector<4x8x8xbf16>
    %42 = vector.shape_cast %39 : vector<4x8x8xbf16> to vector<1x4x8x8xbf16>
    tpu.vector_store %arg6[%c0_13, %c0_14, %c0_15, %c0_16], %42 {strides = array<i32>} : memref<1x4x8x8xbf16, #tpu.memory_space<vmem>>, vector<1x4x8x8xbf16>,
    %43 = vector.extract_strided_slice %28 {offsets = [0, 32], sizes = [8, 32], strides = [1, 1]} : vector<8x96xf32> to vector<8x32xf32>
    %44 = vector.extract_strided_slice %43 {offsets = [0, 0], sizes = [8, 8], strides = [1, 1]} : vector<8x32xf32> to vector<8x8xf32>
    %45 = vector.extract_strided_slice %43 {offsets = [0, 8], sizes = [8, 8], strides = [1, 1]} : vector<8x32xf32> to vector<8x8xf32>
    %46 = vector.extract_strided_slice %43 {offsets = [0, 16], sizes = [8, 8], strides = [1, 1]} : vector<8x32xf32> to vector<8x8xf32>
    %47 = vector.extract_strided_slice %43 {offsets = [0, 24], sizes = [8, 8], strides = [1, 1]} : vector<8x32xf32> to vector<8x8xf32>
    %48 = vector.shape_cast %44 : vector<8x8xf32> to vector<1x8x8xf32>
    %49 = vector.shape_cast %45 : vector<8x8xf32> to vector<1x8x8xf32>
    %50 = vector.shape_cast %46 : vector<8x8xf32> to vector<1x8x8xf32>
    %51 = vector.shape_cast %47 : vector<8x8xf32> to vector<1x8x8xf32>
    %52 = tpu.concatenate %48, %49, %50, %51 in 0 : vector<1x8x8xf32>, vector<1x8x8xf32>, vector<1x8x8xf32>, vector<1x8x8xf32> -> vector<4x8x8xf32>
    %53 = arith.truncf %52 : vector<4x8x8xf32> to vector<4x8x8xbf16>
    %c0_17 = arith.constant 0 : index
    %c0_18 = arith.constant 0 : index
    %c0_19 = arith.constant 0 : index
    %c0_20 = arith.constant 0 : index
    %54 = vector.load %arg7[%c0_17, %c0_18, %c0_19, %c0_20] : memref<1x4x8x8xbf16, #tpu.memory_space<vmem>>, vector<1x4x8x8xbf16>
    %55 = vector.shape_cast %54 : vector<1x4x8x8xbf16> to vector<4x8x8xbf16>
    %56 = vector.shape_cast %53 : vector<4x8x8xbf16> to vector<1x4x8x8xbf16>
    tpu.vector_store %arg7[%c0_17, %c0_18, %c0_19, %c0_20], %56 {strides = array<i32>} : memref<1x4x8x8xbf16, #tpu.memory_space<vmem>>, vector<1x4x8x8xbf16>,
    %57 = vector.extract_strided_slice %28 {offsets = [0, 64], sizes = [8, 32], strides = [1, 1]} : vector<8x96xf32> to vector<8x32xf32>
    %58 = vector.extract_strided_slice %57 {offsets = [0, 0], sizes = [8, 8], strides = [1, 1]} : vector<8x32xf32> to vector<8x8xf32>
    %59 = vector.extract_strided_slice %57 {offsets = [0, 8], sizes = [8, 8], strides = [1, 1]} : vector<8x32xf32> to vector<8x8xf32>
    %60 = vector.extract_strided_slice %57 {offsets = [0, 16], sizes = [8, 8], strides = [1, 1]} : vector<8x32xf32> to vector<8x8xf32>
    %61 = vector.extract_strided_slice %57 {offsets = [0, 24], sizes = [8, 8], strides = [1, 1]} : vector<8x32xf32> to vector<8x8xf32>
    %62 = vector.shape_cast %58 : vector<8x8xf32> to vector<1x8x8xf32>
    %63 = vector.shape_cast %59 : vector<8x8xf32> to vector<1x8x8xf32>
    %64 = vector.shape_cast %60 : vector<8x8xf32> to vector<1x8x8xf32>
    %65 = vector.shape_cast %61 : vector<8x8xf32> to vector<1x8x8xf32>
    %66 = tpu.concatenate %62, %63, %64, %65 in 0 : vector<1x8x8xf32>, vector<1x8x8xf32>, vector<1x8x8xf32>, vector<1x8x8xf32> -> vector<4x8x8xf32>
    %67 = arith.truncf %66 : vector<4x8x8xf32> to vector<4x8x8xbf16>
    %c0_21 = arith.constant 0 : index
    %c0_22 = arith.constant 0 : index
    %c0_23 = arith.constant 0 : index
    %c0_24 = arith.constant 0 : index
    %68 = vector.load %arg8[%c0_21, %c0_22, %c0_23, %c0_24] : memref<1x4x8x8xbf16, #tpu.memory_space<vmem>>, vector<1x4x8x8xbf16>
    %69 = vector.shape_cast %68 : vector<1x4x8x8xbf16> to vector<4x8x8xbf16>
    %70 = vector.shape_cast %67 : vector<4x8x8xbf16> to vector<1x4x8x8xbf16>
    tpu.vector_store %arg8[%c0_21, %c0_22, %c0_23, %c0_24], %70 {strides = array<i32>} : memref<1x4x8x8xbf16, #tpu.memory_space<vmem>>, vector<1x4x8x8xbf16>,
    return
  }
  func.func @transform_0(%arg0: i32, %arg1: i32) -> (i32, i32, i32) {
    %c0_i32 = arith.constant 0 : i32
    %c0_i32_0 = arith.constant 0 : i32
    return %arg0, %arg1, %c0_i32 : i32, i32, i32
  }
  func.func @transform_1(%arg0: i32, %arg1: i32) -> (i32, i32) {
    %c0_i32 = arith.constant 0 : i32
    %c0_i32_0 = arith.constant 0 : i32
    %c0_i32_1 = arith.constant 0 : i32
    return %c0_i32, %c0_i32_0 : i32, i32
  }
  func.func @transform_2(%arg0: i32, %arg1: i32) -> (i32, i32) {
    %c0_i32 = arith.constant 0 : i32
    %c0_i32_0 = arith.constant 0 : i32
    %c0_i32_1 = arith.constant 0 : i32
    return %c0_i32, %c0_i32_0 : i32, i32
  }
  func.func @transform_3(%arg0: i32, %arg1: i32) -> (i32, i32) {
    %c0_i32 = arith.constant 0 : i32
    %c0_i32_0 = arith.constant 0 : i32
    %c0_i32_1 = arith.constant 0 : i32
    return %c0_i32, %c0_i32_0 : i32, i32
  }
  func.func @transform_4(%arg0: i32, %arg1: i32) -> (i32, i32, i32, i32) {
    %c0_i32 = arith.constant 0 : i32
    %c0_i32_0 = arith.constant 0 : i32
    %c0_i32_1 = arith.constant 0 : i32
    return %arg0, %c0_i32, %arg1, %c0_i32_0 : i32, i32, i32, i32
  }
  func.func @transform_5(%arg0: i32, %arg1: i32) -> (i32, i32, i32, i32) {
    %c0_i32 = arith.constant 0 : i32
    %c0_i32_0 = arith.constant 0 : i32
    %c0_i32_1 = arith.constant 0 : i32
    return %arg0, %c0_i32, %arg1, %c0_i32_0 : i32, i32, i32, i32
  }
  func.func @transform_6(%arg0: i32, %arg1: i32) -> (i32, i32, i32, i32) {
    %c0_i32 = arith.constant 0 : i32
    %c0_i32_0 = arith.constant 0 : i32
    %c0_i32_1 = arith.constant 0 : i32
    return %arg0, %c0_i32, %arg1, %c0_i32_0 : i32, i32, i32, i32
  }
}

</mosaic_0001>

<bundles_post_ra>
// kernel: tpu_custom_call.1
= control target key start
LH: loop header
LB: loop body
LE: loop exit
PB: predicated region body
PF: predicated region fallthrough
CT: control target
= control target key end

     0   :  { %s1358_s0 = inlined_call_operand.hbm [shape: f32[2,16,32], index: 0, kind: input, shape index: {}]   ;;  %s1359_s1 = inlined_call_operand.vmem [shape: f32[1,32], index: 1, kind: input, shape index: {}]   ;;  %s1360_s2 = inlined_call_operand.vmem [shape: f32[1,32], index: 2, kind: input, shape index: {}]   ;;  %s1361_s3 = inlined_call_operand.hbm [shape: bf16[32,96], index: 3, kind: input, shape index: {}]   ;;  %s1362_s4 = inlined_call_operand.vmem [shape: bf16[2,4,16,8], index: 4, kind: output, shape index: {0}]   ;;  %s1363_s5 = inlined_call_operand.vmem [shape: bf16[2,4,16,8], index: 5, kind: output, shape index: {1}]   ;;  %s1364_s6 = inlined_call_operand.vmem [shape: bf16[2,4,16,8], index: 6, kind: output, shape index: {2}]  }
   0x1   :  { %1366 = sst [smem:[#allocation13_spill]] %s1361_s3 }
   0x2   :  { %1367 = sst [smem:[#allocation14_spill]] %s1362_s4 }
   0x3   :  { %1368 = sst [smem:[#allocation15_spill]] %s1363_s5 }
   0x4   :  { %1369 = sst [smem:[#allocation16_spill]] %s1364_s6 }
   0x5   :  { %12 = vsyncpa [#allocation3], 0 }
   0x6   :  { %14 = vsyncpa [#allocation3 + $0x1], 0 }
   0x7   :  { %15 = vsyncpa [#allocation5], 0  ;;  %s1133_s21 = smov 0   ;;  %s1135_s22 = smov 0  }
   0x8   :  { %s1137_s23 = smov 0   ;;  %s1139_s24 = smov 0  }
   0x9   :  { %s1141_s25 = smov 0   ;;  %s1143_s26 = smov 0  }
   0xa   :  { %s1145_s27 = smov 0   ;;  %s1147_s28 = smov 0  }
   0xb LB: > { %1370 = sst [smem:[#allocation11_spill]] %s1069_s24  ;;  %s815_s29 = sadd.s32 4294967295, %s1085_s28   ;;  %s1085_s28 = sphi %s1147_s28, %s21_s28   ;;  %s1081_s27 = sphi %s1145_s27, %s1395_s27   ;;  %s1077_s26 = sphi %s1143_s26, %s1394_s26   ;;  %s1073_s25 = sphi %s1141_s25, %s1393_s25   ;;  %s1069_s24 = sphi %s1139_s24, %s1392_s24   ;;  %s1065_s23 = sphi %s1137_s23, %s1391_s23   ;;  %s1061_s22 = sphi %s1135_s22, %s1390_s22   ;;  %s1057_s21 = sphi %s1133_s21, %s1389_s21  }
   0xc   : > { %p55_p0 = scmp.ne.s32.totalorder %s1061_s22, %s1057_s21  ;;  %p1173_p1 = scmp.eq.s32.totalorder %s815_s29, 0 }
   0xd   : > { %p817_p2 = scmp.ge.s32.totalorder %s1085_s28, 1  ;;  %p213_p3 = scmp.lt.s32.totalorder %s1085_s28, 5 }
   0xe   : > { %p1181_p4 = por %p1173_p1, %p55_p0  ;;  %s1087_s9 = smov [#allocation4]  }
   0xf   : > { %p1185_p5 = pnand %p817_p2, %p213_p3  ;;  %s231_s10 = sshll.u32 %s1087_s9, 4  ;;  %s232_s10 = int_to_ptr.vmem [resolvable:$true] %s231_s10 }
  0x10   : > { %s972_s11 = scalar_lea.vmem %s232_s10, 256  ;;  %p980_p12 = scmp.lt.s32.totalorder %s232_s10, %s232_s10 }
  0x11   : > { %p870_p6 = pneg %p1185_p5  ;;  %p973_p9 = scmp.ne.s32.totalorder %s232_s10, %s972_s11 }
  0x12   : > { %p981_p13 = scmp.lt.s32.totalorder %s972_s11, %s972_s11 }
  0x13   : > { %p871_p7 = pnand %p870_p6, %p1173_p1 }
  0x14   : > { %p982_p0 = por %p981_p13, %p980_p12 }
  0x15   : > { %p963_p8 = pneg %p871_p7 }
  0x17   : > { %p975_p10 = pnand %p973_p9, %p963_p8 }
  0x19   : > { %p976_p11 = pneg %p975_p10 }
  0x1b   : > { %p983_p2 = pnand %p982_p0, %p976_p11 }
  0x1d   : > { %986 = shalt.err (!%p983_p2)
}
  0x1e   : > { %s1088_s12 = smov 64   ;;  %s1089_s13 = smov 4  }
  0x1f   : > { %s1374_s3 = sld [smem:[#allocation13_spill]]  ;;  %p144_p3 = scmp.eq.s32.totalorder %s815_s29, 3 }
  0x20   : > { %s30_s16 = sadd.s32 1, %s1077_s26  ;;  %s33_s17 = sadd.s32 1, %s1081_s27 }
  0x21   : > { %p31_p6 = scmp.ge.s32.totalorder %s30_s16, 2  ;;  %p49_p8 = scmp.ne.s32.totalorder %s1065_s23, %s1061_s22 }
  0x22   : > { %p50_p9 = scmp.eq.s32.totalorder %s1085_s28, 0  ;;  %s42_s19 = sadd.s32 1, %s1065_s23 }
  0x23   : > { %s1397_s16 = smov (%p31_p6, %s30_s16), 0  ;;  %s1399_s17 = smov (!%p31_p6, %s33_s17), %s1081_s27 }
  0x24   : > { %1375 = sst [smem:[#allocation12_spill]] %s1397_s16  ;;  %s38_s18 = ssub.s32 %s1077_s26, %s1397_s16 }
  0x25   : > { %873 = dma.hbm_to_vmem [thread:$0]  (!%p871_p7), %s1374_s3, 256, %s232_s10, [#allocation5], %s1088_s12, %s1088_s12, %s1089_s13  }
  0x26   : > { %p35_p10 = scmp.ge.s32.totalorder %s1399_s17, 2  ;;  %p1207_p11 = por %p144_p3, %p49_p8 }
  0x27   : > { %p1211_p7 = por %p50_p9, %p49_p8  ;;  %s245_s29 = sand.u32 1, %s1065_s23  }
  0x28   : > { %s1376_s20 = scalar_select %p1207_p11, 1, 0 }
  0x29   : > { %s1401_s17 = smov (%p35_p10, %s1399_s17), 0  ;;  %p879_p12 = scmp.lt.s32.totalorder %s1085_s28, 4 }
  0x2a   : > { %s820_s9 = sshll.u32 %s245_s29, 3  ;;  %s37_s10 = ssub.s32 %s1081_s27, %s1401_s17 }
  0x2b   : > { %s39_s11 = sor.u32 %s38_s18, %s37_s10  ;;  %s821_s12 = sshll.u32 %s1081_s27, 1 }
  0x2c   : > { %p40_p13 = scmp.eq.s32.totalorder %s39_s11, 0  ;;  %s254_s13 = sadd.s32 %s1077_s26, %s821_s12 }
  0x2d   : > { %s822_s14 = sshll.u32 %s254_s13, 7  ;;  %s249_s15 = scalar_lea.vmem [#allocation2], %s820_s9 }
  0x2e   : > { %s258_s3 = sshll.u32 %s249_s15, 4  ;;  %s256_s4 = scalar_lea.hbm %s1358_s0, %s822_s14  ;;  %s259_s3 = int_to_ptr.vmem [resolvable:$true] %s258_s3 }
  0x2f   : > { %s1224_s16 = scalar_select %p40_p13, %s1065_s23, %s42_s19  }
  0x30   : > { %p1233_p0 = pnand %p879_p12, %p1211_p7  ;;  %s246_s18 = scalar_lea.sflag [#allocation3], %s245_s29 }
  0x31   : > { %s1000_s10 = scalar_lea.vmem %s259_s3, 128  ;;  %s1090_s19 = smov [#allocation2]  }
  0x32   : > { %p989_p2 = pneg %p1233_p0  ;;  %p1001_p3 = scmp.ne.s32.totalorder %s259_s3, %s1000_s10 }
  0x33   : > { %s1005_s9 = sshll.u32 %s1090_s19, 4  ;;  %s1006_s9 = int_to_ptr.vmem [resolvable:$false] %s1005_s9 }
  0x34   : > { %p1003_p6 = pnand %p1001_p3, %p989_p2  ;;  %s1007_s5 = scalar_lea.vmem %s1006_s9, 256 }
  0x35   : > { %p1008_p9 = scmp.lt.s32.totalorder %s259_s3, %s1006_s9  ;;  %p1009_p10 = scmp.lt.s32.totalorder %s1007_s5, %s1000_s10 }
  0x36   : > { %p1004_p8 = pneg %p1003_p6 }
  0x37   : > { %p1010_p13 = por %p1009_p10, %p1008_p9 }
  0x39   : > { %p1011_p11 = pnand %p1010_p13, %p1004_p8 }
  0x3b   : > { %1014 = shalt.err (!%p1011_p11)
}
  0x3c   : > { %877 = dma.hbm_to_vmem [thread:$0]  (!%p1233_p0), %s256_s4, 128, %s259_s3, %s246_s18  }
  0x3d   : > { %267 = sbr.rel (%p1185_p5) target bundleno = 864 (0x360), region = 36  ;;  %s1244_s6 = sand.u32 (!%p1185_p5), 1, %s1061_s22  }
  0x3e   : > { %s824_s21 = sshll.u32 (!%p1185_p5), %s1244_s6, 3  ;;  %s270_s29 = scalar_lea.sflag (!%p1185_p5), [#allocation3], %s1244_s6 }
  0x3f   : > { %s273_s11 = scalar_lea.vmem (!%p1185_p5), [#allocation2], %s824_s21 }
  0x42   : > { %1048 = dma.done.wait (%p1181_p4), %s270_s29, 128  }
  0x43   : > { %1050 = vsyncadd (%p1181_p4), %s270_s29, 4294967168 }
  0x44   : > { %1052 = dma.done.wait (%p1173_p1), [#allocation5], 256  }
  0x45   : > { %1054 = vsyncadd (%p1173_p1), [#allocation5], 4294967040  ;;  %vm317_vm0 = vcmask 261120   ;;  %v314_v0 = vld [vmem:[%s273_s11] sm:$0xff]  ;;  %v955_v7 = vld [vmem:[#allocation4 + $0x8] sm:$0xff]   ;;  %v1091_v8 = vmov 0.0  }
  0x46   : > { %v318_v1 = vsel %vm317_vm0, %v314_v0, 0.0  ;;  %856 = vmatprep.subr.bf16.mxu0 %v1091_v8  ;;  %vm1092_vm1 = vmmov 0   ;;  %v956_v9 = vld [vmem:[#allocation4] sm:$0xff]   ;;  %v829_v19 = vld [vmem:[%s1359_s1] ss:$0 sm:$0xff]  ;;  %s1266_s7 = sshll.u32 %s1244_s6, 4 }
  0x47   : > { %319 = vadd.xlane.f32.xlu0 %v318_v1  ;;  %860 = vmatprep.mubr.msk.bf16.mxu0 %vm1092_vm1, %v1091_v8  ;;  %v830_v21 = vld [vmem:[%s1360_s2] ss:$0 sm:$0xff]  ;;  %vm427_vm4 = vcmask 60416   ;;  %s1093_s8 = smov 104   ;;  %s1094_s12 = smov 120  }
  0x48   : > { %857 = vmatpush3.bf16.msra.mxu0 %v955_v7  ;;  %s1269_s13 = scalar_lea.vmem [#allocation6], %s1266_s7  ;;  %s1095_s14 = smov 112  }
  0x49   : > { %858 = vmatprep.subr.bf16.mxu0 %v1091_v8  ;;  %s1096_s15 = smov 96   ;;  %s1097_s18 = smov 64  }
  0x4a   : > { %s1280_s10 = scalar_lea.vmem [#allocation7], %s1266_s7  ;;  %s1285_s19 = scalar_lea.vmem [#allocation8], %s1266_s7 }
  0x4b   : > { %p1379_p1 = scmp.ne.s32.totalorder %s1376_s20, 0 }
  0x4c   : > { %859 = vmatpush3.bf16.msra.mxu0 %v956_v9  ;;  %s1380_s9 = sld [smem:[#allocation11_spill]] (%p1379_p1)  ;;  %s841_s5 = sshll.u32 (%p1379_p1), %s1073_s25, 3 }
  0x4d   : > { %s1381_s3 = sld [smem:[#allocation14_spill]] (%p1379_p1) }
  0x52   : > { %s492_s6 = sadd.s32 (%p1379_p1), %s1380_s9, %s841_s5 }
  0x53   : > { %s842_s21 = sshll.u32 (%p1379_p1), %s492_s6, 2 }
  0x54   : > { %s494_s4 = scalar_lea.vmem (%p1379_p1), %s1381_s3, %s842_s21 }
  0xd0   : > { %v320_v2 = vpop.xlane.xlu0 %319 }
  0xd1   : > { %v322_v3 = vmul.f32 0.03125, %v320_v2 }
  0xd3   : > { %v323_v4 = vsub.f32 %v314_v0, %v322_v3 }
  0xd5   : > { %v324_v5 = vmul.f32 %v323_v4, %v323_v4 }
  0xd7   : > { %v325_v6 = vsel %vm317_vm0, %v324_v5, 0.0 }
  0xd8   : > { %326 = vadd.xlane.f32.xlu0 %v325_v6 }
 0x161   : > { %v327_v10 = vpop.xlane.xlu0 %326 }
 0x162   : > { %v328_v11 = vmul.f32 0.03125, %v327_v10 }
 0x164   : > { %v329_v12 = vadd.f32 1e-05, %v328_v11 }
 0x166   : > { %957 = vrsqrt.f32 %v329_v12  ;;  %vm332_vm2 = vcmp.eq.f32.partialorder %v329_v12, inf  ;;  %v335_v15 = vand.u32 2147483648, %v329_v12  ;;  %vm334_vm3 = vcmp.eq.f32.partialorder %v329_v12, 0.0 }
 0x173   : > { %v958_v13 = vpop.eup %957 }
 0x174   : > { %v331_v14 = vmul.f32 %v958_v13, %v329_v12 }
 0x176   : > { %v333_v16 = vsel %vm332_vm2, %v329_v12, %v331_v14 }
 0x177   : > { %v336_v17 = vsel %vm334_vm3, %v335_v15, %v333_v16 }
 0x178   : > { %959 = vrcp.f32 %v336_v17 }
 0x185   : > { %v960_v18 = vpop.eup %959 }
 0x186   : > { %v338_v20 = vmul.f32 %v960_v18, %v323_v4 }
 0x188   : > { %v345_v22 = vmul.f32 %v829_v19, %v338_v20 }
 0x18a   : > { %v352_v23 = vadd.f32 %v830_v21, %v345_v22 }
 0x18c   : > { %v353_v24 = vpack.c.bf16 %v352_v23, %v352_v23 }
 0x18e   : > { %861 = vmatmul.mubr.msk.bf16.vlgmr.msra.gmra.mxu0 %vm317_vm0, %v353_v24 }
 0x24e   : > { %v407_v25 = vpop.f32.mrf.mxu0 }
 0x24f   : > { %420 = vrot.lane.b32.xlu0 %v407_v25, %s1093_s8  ;;  %414 = vrot.lane.b32.xlu1 %v407_v25, %s1094_s12  ;;  %v423_v26 = vpack.c.bf16 %v407_v25, %v407_v25 }
 0x250   : > { %v862_v27 = vpop.f32.mrf.mxu0 }
 0x251   : > { %428 = vst.msk [vmem:[%s1269_s13] sm:$0xf] %vm427_vm4, %v423_v26 }
 0x252   : > { %v410_v28 = vpop.f32.mrf.mxu0 }
 0x253   : > { %417 = vrot.lane.b32.xlu1 %v407_v25, %s1095_s14 }
 0x254   : > { %v863_v29 = vpop.f32.mrf.mxu0 }
 0x257   : > { %444 = vrot.lane.b32.xlu1 %v423_v26, %s1096_s15 }
 0x258   : > { %v511_v44 = vld [vmem:[%s1269_s13] sm:$0xf] (%p1379_p1) }
 0x259   : > { %512 = vst [vmem:[%s494_s4] sm:$0xf] (%p1379_p1), %v511_v44 }
 0x25b   : > { %460 = vrot.lane.b32.xlu1 %v423_v26, %s1097_s18 }
 0x2c1   : > { %v421_v30 = vpop.permute.xlu0 %420  ;;  %v415_v31 = vpop.permute.xlu1 %414 }
 0x2c2   : > { %v426_v32 = vpack.c.bf16 %v421_v30, %v421_v30  ;;  %v424_v33 = vpack.c.bf16 %v415_v31, %v415_v31 }
 0x2c4   : > { %431 = vst.msk [vmem:[%s1269_s13 + $0xc] sm:$0xf] %vm427_vm4, %v426_v32  ;;  %429 = vst.msk [vmem:[%s1269_s13 + $0x4] sm:$0xf] %vm427_vm4, %v424_v33  ;;  %446 = vrot.lane.b32.xlu1 %v424_v33, %s1096_s15 }
 0x2c5   : > { %v418_v34 = vpop.permute.xlu1 %417 }
 0x2c6   : > { %v425_v35 = vpack.c.bf16 %v418_v34, %v418_v34 }
 0x2c8   : > { %430 = vst.msk [vmem:[%s1269_s13 + $0x8] sm:$0xf] %vm427_vm4, %v425_v35  ;;  %464 = vrot.lane.b32.xlu0 %v425_v35, %s1097_s18  ;;  %448 = vrot.lane.b32.xlu1 %v425_v35, %s1096_s15 }
 0x2c9   : > { %v445_v36 = vpop.permute.xlu1 %444 }
 0x2ca   : > { %456 = vst.msk [vmem:[%s1280_s10] sm:$0xf] %vm427_vm4, %v445_v36 }
 0x2cb   : > { %v513_v45 = vld [vmem:[%s1269_s13 + $0x4] sm:$0xf] (%p1379_p1)  ;;  %v517_v47 = vld [vmem:[%s1269_s13 + $0xc] sm:$0xf] (%p1379_p1) }
 0x2cc   : > { %450 = vrot.lane.b32.xlu1 %v426_v32, %s1096_s15  ;;  %514 = vst [vmem:[%s494_s4 + $0x8] sm:$0xf] (%p1379_p1), %v513_v45  ;;  %518 = vst [vmem:[%s494_s4 + $0x18] sm:$0xf] (%p1379_p1), %v517_v47 }
 0x2cd   : > { %v461_v37 = vpop.permute.xlu1 %460 }
 0x2ce   : > { %472 = vst.msk [vmem:[%s1285_s19] sm:$0xf] %vm427_vm4, %v461_v37 }
 0x2cf   : > { %v515_v46 = vld [vmem:[%s1269_s13 + $0x8] sm:$0xf] (%p1379_p1) }
 0x2d0   : > { %462 = vrot.lane.b32.xlu1 %v424_v33, %s1097_s18  ;;  %516 = vst [vmem:[%s494_s4 + $0x10] sm:$0xf] (%p1379_p1), %v515_v46 }
 0x2d4   : > { %466 = vrot.lane.b32.xlu1 %v426_v32, %s1097_s18 }
 0x336   : > { %v447_v38 = vpop.permute.xlu1 %446 }
 0x337   : > { %457 = vst.msk [vmem:[%s1280_s10 + $0x4] sm:$0xf] %vm427_vm4, %v447_v38 }
 0x33a   : > { %v465_v39 = vpop.permute.xlu0 %464  ;;  %v449_v40 = vpop.permute.xlu1 %448 }
 0x33b   : > { %474 = vst.msk [vmem:[%s1285_s19 + $0x8] sm:$0xf] %vm427_vm4, %v465_v39  ;;  %458 = vst.msk [vmem:[%s1280_s10 + $0x8] sm:$0xf] %vm427_vm4, %v449_v40 }
 0x33e   : > { %v451_v41 = vpop.permute.xlu1 %450 }
 0x33f   : > { %459 = vst.msk [vmem:[%s1280_s10 + $0xc] sm:$0xf] %vm427_vm4, %v451_v41 }
 0x342   : > { %v463_v42 = vpop.permute.xlu1 %462 }
 0x343   : > { %473 = vst.msk [vmem:[%s1285_s19 + $0x4] sm:$0xf] %vm427_vm4, %v463_v42  ;;  %490 = sbr.rel (!%p1379_p1) target bundleno = 840 (0x348), region = 48 }
 0x346   : > { %v467_v43 = vpop.permute.xlu1 %466 }
 0x347   : > { %475 = vst.msk [vmem:[%s1285_s19 + $0xc] sm:$0xf] %vm427_vm4, %v467_v43 }
 0x348 PF: > { %p1382_p4 = scmp.ne.s32.totalorder %s1376_s20, 0 }
 0x349   : > { %s1383_s24 = sld [smem:[#allocation11_spill]] (%p1382_p4)  ;;  %s843_s30 = sshll.u32 (%p1382_p4), %s1073_s25, 3  ;;  %v571_v48 = vld [vmem:[%s1280_s10] sm:$0xf] (%p1382_p4)  ;;  %v573_v49 = vld [vmem:[%s1280_s10 + $0x4] sm:$0xf] (%p1382_p4) }
 0x34a   : > { %550 = sbr.rel (!%p1382_p4) target bundleno = 852 (0x354), region = 89  ;;  %v575_v50 = vld [vmem:[%s1280_s10 + $0x8] sm:$0xf] (%p1382_p4)  ;;  %v577_v51 = vld [vmem:[%s1280_s10 + $0xc] sm:$0xf] (%p1382_p4)  ;;  %s1384_s14 = sld [smem:[#allocation15_spill]] (%p1382_p4) }
 0x34f   : > { %s552_s7 = sadd.s32 %s1383_s24, %s843_s30 }
 0x350   : > { %s844_s8 = sshll.u32 %s552_s7, 2 }
 0x351   : > { %s554_s15 = scalar_lea.vmem %s1384_s14, %s844_s8 }
 0x352   : > { %572 = vst [vmem:[%s554_s15] sm:$0xf] %v571_v48  ;;  %574 = vst [vmem:[%s554_s15 + $0x8] sm:$0xf] %v573_v49 }
 0x353   : > { %576 = vst [vmem:[%s554_s15 + $0x10] sm:$0xf] %v575_v50  ;;  %578 = vst [vmem:[%s554_s15 + $0x18] sm:$0xf] %v577_v51 }
 0x354 PF: > { %p1385_p5 = scmp.ne.s32.totalorder %s1376_s20, 0 }
 0x355   : > { %s1386_s18 = sld [smem:[#allocation11_spill]] (%p1385_p5)  ;;  %s845_s10 = sshll.u32 (%p1385_p5), %s1073_s25, 3  ;;  %v631_v52 = vld [vmem:[%s1285_s19] sm:$0xf] (%p1385_p5)  ;;  %v633_v53 = vld [vmem:[%s1285_s19 + $0x4] sm:$0xf] (%p1385_p5) }
 0x356   : > { %610 = sbr.rel (!%p1385_p5) target bundleno = 864 (0x360), region = 130  ;;  %v635_v54 = vld [vmem:[%s1285_s19 + $0x8] sm:$0xf] (%p1385_p5)  ;;  %v637_v55 = vld [vmem:[%s1285_s19 + $0xc] sm:$0xf] (%p1385_p5)  ;;  %s1387_s29 = sld [smem:[#allocation16_spill]] (%p1385_p5) }
 0x35b   : > { %s612_s9 = sadd.s32 %s1386_s18, %s845_s10 }
 0x35c   : > { %s846_s5 = sshll.u32 %s612_s9, 2 }
 0x35d   : > { %s614_s11 = scalar_lea.vmem %s1387_s29, %s846_s5 }
 0x35e   : > { %632 = vst [vmem:[%s614_s11] sm:$0xf] %v631_v52  ;;  %634 = vst [vmem:[%s614_s11 + $0x8] sm:$0xf] %v633_v53 }
 0x35f   : > { %636 = vst [vmem:[%s614_s11 + $0x10] sm:$0xf] %v635_v54  ;;  %638 = vst [vmem:[%s614_s11 + $0x18] sm:$0xf] %v637_v55 }
 0x360 PF: > { %s21_s28 = sadd.s32 1, %s1085_s28   ;;  %s1388_s20 = sld [smem:[#allocation12_spill]] }
 0x361   : > { %p18_p11 = scmp.ge.s32.totalorder %s21_s28, 6   ;;  %s1389_s21 = smov %s1061_s22 }
 0x362   : > { %s1390_s22 = smov %s1065_s23  ;;  %s1391_s23 = smov %s1224_s16 }
 0x363   : > { %s1392_s24 = smov %s1077_s26  ;;  %s1393_s25 = smov %s1081_s27 }
 0x364   : > { %s1395_s27 = smov %s1401_s17  ;;  %20 = sbr.rel (!%p18_p11) target bundleno = 11 (0xb), region = 227 }
 0x366   : > { %s1394_s26 = smov %s1388_s20 }
 0x369   :  { %694 = vsyncpa [#allocation3], 1 }
 0x36a   :  { %696 = vsyncpa [#allocation3 + $0x1], 1 }
 0x36b   :  { %697 = vsyncpa [#allocation5], 1 }

// kernel: tpu_custom_call.1
= control target key start
LH: loop header
LB: loop body
LE: loop exit
PB: predicated region body
PF: predicated region fallthrough
CT: control target
= control target key end

     0   :  { %s1358_s0 = inlined_call_operand.hbm [shape: f32[2,16,32], index: 0, kind: input, shape index: {}]   ;;  %s1359_s1 = inlined_call_operand.vmem [shape: f32[1,32], index: 1, kind: input, shape index: {}]   ;;  %s1360_s2 = inlined_call_operand.vmem [shape: f32[1,32], index: 2, kind: input, shape index: {}]   ;;  %s1361_s3 = inlined_call_operand.hbm [shape: bf16[32,96], index: 3, kind: input, shape index: {}]   ;;  %s1362_s4 = inlined_call_operand.vmem [shape: bf16[2,4,16,8], index: 4, kind: output, shape index: {0}]   ;;  %s1363_s5 = inlined_call_operand.vmem [shape: bf16[2,4,16,8], index: 5, kind: output, shape index: {1}]   ;;  %s1364_s6 = inlined_call_operand.vmem [shape: bf16[2,4,16,8], index: 6, kind: output, shape index: {2}]  }
   0x1   :  { %1366 = sst [smem:[#allocation13_spill]] %s1361_s3 }
   0x2   :  { %1367 = sst [smem:[#allocation14_spill]] %s1362_s4 }
   0x3   :  { %1368 = sst [smem:[#allocation15_spill]] %s1363_s5 }
   0x4   :  { %1369 = sst [smem:[#allocation16_spill]] %s1364_s6 }
   0x5   :  { %12 = vsyncpa [#allocation3], 0 }
   0x6   :  { %14 = vsyncpa [#allocation3 + $0x1], 0 }
   0x7   :  { %15 = vsyncpa [#allocation5], 0  ;;  %s1133_s21 = smov 0   ;;  %s1135_s22 = smov 0  }
   0x8   :  { %s1137_s23 = smov 0   ;;  %s1139_s24 = smov 0  }
   0x9   :  { %s1141_s25 = smov 0   ;;  %s1143_s26 = smov 0  }
   0xa   :  { %s1145_s27 = smov 0   ;;  %s1147_s28 = smov 0  }
   0xb LB: > { %1370 = sst [smem:[#allocation11_spill]] %s1069_s24  ;;  %s815_s29 = sadd.s32 4294967295, %s1085_s28   ;;  %s1085_s28 = sphi %s1147_s28, %s21_s28   ;;  %s1081_s27 = sphi %s1145_s27, %s1395_s27   ;;  %s1077_s26 = sphi %s1143_s26, %s1394_s26   ;;  %s1073_s25 = sphi %s1141_s25, %s1393_s25   ;;  %s1069_s24 = sphi %s1139_s24, %s1392_s24   ;;  %s1065_s23 = sphi %s1137_s23, %s1391_s23   ;;  %s1061_s22 = sphi %s1135_s22, %s1390_s22   ;;  %s1057_s21 = sphi %s1133_s21, %s1389_s21  }
   0xc   : > { %p55_p0 = scmp.ne.s32.totalorder %s1061_s22, %s1057_s21  ;;  %p1173_p1 = scmp.eq.s32.totalorder %s815_s29, 0 }
   0xd   : > { %p817_p2 = scmp.ge.s32.totalorder %s1085_s28, 1  ;;  %p213_p3 = scmp.lt.s32.totalorder %s1085_s28, 5 }
   0xe   : > { %p1181_p4 = por %p1173_p1, %p55_p0  ;;  %s1087_s9 = smov [#allocation4]  }
   0xf   : > { %p1185_p5 = pnand %p817_p2, %p213_p3  ;;  %s231_s10 = sshll.u32 %s1087_s9, 4  ;;  %s232_s10 = int_to_ptr.vmem [resolvable:$true] %s231_s10 }
  0x10   : > { %s972_s11 = scalar_lea.vmem %s232_s10, 256  ;;  %p980_p12 = scmp.lt.s32.totalorder %s232_s10, %s232_s10 }
  0x11   : > { %p870_p6 = pneg %p1185_p5  ;;  %p973_p9 = scmp.ne.s32.totalorder %s232_s10, %s972_s11 }
  0x12   : > { %p981_p13 = scmp.lt.s32.totalorder %s972_s11, %s972_s11 }
  0x13   : > { %p871_p7 = pnand %p870_p6, %p1173_p1 }
  0x14   : > { %p982_p0 = por %p981_p13, %p980_p12 }
  0x15   : > { %p963_p8 = pneg %p871_p7 }
  0x17   : > { %p975_p10 = pnand %p973_p9, %p963_p8 }
  0x19   : > { %p976_p11 = pneg %p975_p10 }
  0x1b   : > { %p983_p2 = pnand %p982_p0, %p976_p11 }
  0x1d   : > { %986 = shalt.err (!%p983_p2)
}
  0x1e   : > { %s1088_s12 = smov 64   ;;  %s1089_s13 = smov 4  }
  0x1f   : > { %s1374_s3 = sld [smem:[#allocation13_spill]]  ;;  %p144_p3 = scmp.eq.s32.totalorder %s815_s29, 3 }
  0x20   : > { %s30_s16 = sadd.s32 1, %s1077_s26  ;;  %s33_s17 = sadd.s32 1, %s1081_s27 }
  0x21   : > { %p31_p6 = scmp.ge.s32.totalorder %s30_s16, 2  ;;  %p49_p8 = scmp.ne.s32.totalorder %s1065_s23, %s1061_s22 }
  0x22   : > { %p50_p9 = scmp.eq.s32.totalorder %s1085_s28, 0  ;;  %s42_s19 = sadd.s32 1, %s1065_s23 }
  0x23   : > { %s1397_s16 = smov (%p31_p6, %s30_s16), 0  ;;  %s1399_s17 = smov (!%p31_p6, %s33_s17), %s1081_s27 }
  0x24   : > { %1375 = sst [smem:[#allocation12_spill]] %s1397_s16  ;;  %s38_s18 = ssub.s32 %s1077_s26, %s1397_s16 }
  0x25   : > { %873 = dma.hbm_to_vmem [thread:$0]  (!%p871_p7), %s1374_s3, 256, %s232_s10, [#allocation5], %s1088_s12, %s1088_s12, %s1089_s13  }
  0x26   : > { %p35_p10 = scmp.ge.s32.totalorder %s1399_s17, 2  ;;  %p1207_p11 = por %p144_p3, %p49_p8 }
  0x27   : > { %p1211_p7 = por %p50_p9, %p49_p8  ;;  %s245_s29 = sand.u32 1, %s1065_s23  }
  0x28   : > { %s1376_s20 = scalar_select %p1207_p11, 1, 0 }
  0x29   : > { %s1401_s17 = smov (%p35_p10, %s1399_s17), 0  ;;  %p879_p12 = scmp.lt.s32.totalorder %s1085_s28, 4 }
  0x2a   : > { %s820_s9 = sshll.u32 %s245_s29, 3  ;;  %s37_s10 = ssub.s32 %s1081_s27, %s1401_s17 }
  0x2b   : > { %s39_s11 = sor.u32 %s38_s18, %s37_s10  ;;  %s821_s12 = sshll.u32 %s1081_s27, 1 }
  0x2c   : > { %p40_p13 = scmp.eq.s32.totalorder %s39_s11, 0  ;;  %s254_s13 = sadd.s32 %s1077_s26, %s821_s12 }
  0x2d   : > { %s822_s14 = sshll.u32 %s254_s13, 7  ;;  %s249_s15 = scalar_lea.vmem [#allocation2], %s820_s9 }
  0x2e   : > { %s258_s3 = sshll.u32 %s249_s15, 4  ;;  %s256_s4 = scalar_lea.hbm %s1358_s0, %s822_s14  ;;  %s259_s3 = int_to_ptr.vmem [resolvable:$true] %s258_s3 }
  0x2f   : > { %s1224_s16 = scalar_select %p40_p13, %s1065_s23, %s42_s19  }
  0x30   : > { %p1233_p0 = pnand %p879_p12, %p1211_p7  ;;  %s246_s18 = scalar_lea.sflag [#allocation3], %s245_s29 }
  0x31   : > { %s1000_s10 = scalar_lea.vmem %s259_s3, 128  ;;  %s1090_s19 = smov [#allocation2]  }
  0x32   : > { %p989_p2 = pneg %p1233_p0  ;;  %p1001_p3 = scmp.ne.s32.totalorder %s259_s3, %s1000_s10 }
  0x33   : > { %s1005_s9 = sshll.u32 %s1090_s19, 4  ;;  %s1006_s9 = int_to_ptr.vmem [resolvable:$false] %s1005_s9 }
  0x34   : > { %p1003_p6 = pnand %p1001_p3, %p989_p2  ;;  %s1007_s5 = scalar_lea.vmem %s1006_s9, 256 }
  0x35   : > { %p1008_p9 = scmp.lt.s32.totalorder %s259_s3, %s1006_s9  ;;  %p1009_p10 = scmp.lt.s32.totalorder %s1007_s5, %s1000_s10 }
  0x36   : > { %p1004_p8 = pneg %p1003_p6 }
  0x37   : > { %p1010_p13 = por %p1009_p10, %p1008_p9 }
  0x39   : > { %p1011_p11 = pnand %p1010_p13, %p1004_p8 }
  0x3b   : > { %1014 = shalt.err (!%p1011_p11)
}
  0x3c   : > { %877 = dma.hbm_to_vmem [thread:$0]  (!%p1233_p0), %s256_s4, 128, %s259_s3, %s246_s18  }
  0x3d   : > { %267 = sbr.rel (%p1185_p5) target bundleno = 864 (0x360), region = 36  ;;  %s1244_s6 = sand.u32 (!%p1185_p5), 1, %s1061_s22  }
  0x3e   : > { %s824_s21 = sshll.u32 (!%p1185_p5), %s1244_s6, 3  ;;  %s270_s29 = scalar_lea.sflag (!%p1185_p5), [#allocation3], %s1244_s6 }
  0x3f   : > { %s273_s11 = scalar_lea.vmem (!%p1185_p5), [#allocation2], %s824_s21 }
  0x42   : > { %1048 = dma.done.wait (%p1181_p4), %s270_s29, 128  }
  0x43   : > { %1050 = vsyncadd (%p1181_p4), %s270_s29, 4294967168 }
  0x44   : > { %1052 = dma.done.wait (%p1173_p1), [#allocation5], 256  }
  0x45   : > { %1054 = vsyncadd (%p1173_p1), [#allocation5], 4294967040  ;;  %vm317_vm0 = vcmask 261120   ;;  %v314_v0 = vld [vmem:[%s273_s11] sm:$0xff]  ;;  %v955_v7 = vld [vmem:[#allocation4 + $0x8] sm:$0xff]   ;;  %v1091_v8 = vmov 0.0  }
  0x46   : > { %v318_v1 = vsel %vm317_vm0, %v314_v0, 0.0  ;;  %856 = vmatprep.subr.bf16.mxu0 %v1091_v8  ;;  %vm1092_vm1 = vmmov 0   ;;  %v956_v9 = vld [vmem:[#allocation4] sm:$0xff]   ;;  %v829_v19 = vld [vmem:[%s1359_s1] ss:$0 sm:$0xff]  ;;  %s1266_s7 = sshll.u32 %s1244_s6, 4 }
  0x47   : > { %319 = vadd.xlane.f32.xlu0 %v318_v1  ;;  %860 = vmatprep.mubr.msk.bf16.mxu0 %vm1092_vm1, %v1091_v8  ;;  %v830_v21 = vld [vmem:[%s1360_s2] ss:$0 sm:$0xff]  ;;  %vm427_vm4 = vcmask 60416   ;;  %s1093_s8 = smov 104   ;;  %s1094_s12 = smov 120  }
  0x48   : > { %857 = vmatpush3.bf16.msra.mxu0 %v955_v7  ;;  %s1269_s13 = scalar_lea.vmem [#allocation6], %s1266_s7  ;;  %s1095_s14 = smov 112  }
  0x49   : > { %858 = vmatprep.subr.bf16.mxu0 %v1091_v8  ;;  %s1096_s15 = smov 96   ;;  %s1097_s18 = smov 64  }
  0x4a   : > { %s1280_s10 = scalar_lea.vmem [#allocation7], %s1266_s7  ;;  %s1285_s19 = scalar_lea.vmem [#allocation8], %s1266_s7 }
  0x4b   : > { %p1379_p1 = scmp.ne.s32.totalorder %s1376_s20, 0 }
  0x4c   : > { %859 = vmatpush3.bf16.msra.mxu0 %v956_v9  ;;  %s1380_s9 = sld [smem:[#allocation11_spill]] (%p1379_p1)  ;;  %s841_s5 = sshll.u32 (%p1379_p1), %s1073_s25, 3 }
  0x4d   : > { %s1381_s3 = sld [smem:[#allocation14_spill]] (%p1379_p1) }
  0x52   : > { %s492_s6 = sadd.s32 (%p1379_p1), %s1380_s9, %s841_s5 }
  0x53   : > { %s842_s21 = sshll.u32 (%p1379_p1), %s492_s6, 2 }
  0x54   : > { %s494_s4 = scalar_lea.vmem (%p1379_p1), %s1381_s3, %s842_s21 }
  0xd0   : > { %v320_v2 = vpop.xlane.xlu0 %319 }
  0xd1   : > { %v322_v3 = vmul.f32 0.03125, %v320_v2 }
  0xd3   : > { %v323_v4 = vsub.f32 %v314_v0, %v322_v3 }
  0xd5   : > { %v324_v5 = vmul.f32 %v323_v4, %v323_v4 }
  0xd7   : > { %v325_v6 = vsel %vm317_vm0, %v324_v5, 0.0 }
  0xd8   : > { %326 = vadd.xlane.f32.xlu0 %v325_v6 }
 0x161   : > { %v327_v10 = vpop.xlane.xlu0 %326 }
 0x162   : > { %v328_v11 = vmul.f32 0.03125, %v327_v10 }
 0x164   : > { %v329_v12 = vadd.f32 1e-05, %v328_v11 }
 0x166   : > { %957 = vrsqrt.f32 %v329_v12  ;;  %vm332_vm2 = vcmp.eq.f32.partialorder %v329_v12, inf  ;;  %v335_v15 = vand.u32 2147483648, %v329_v12  ;;  %vm334_vm3 = vcmp.eq.f32.partialorder %v329_v12, 0.0 }
 0x173   : > { %v958_v13 = vpop.eup %957 }
 0x174   : > { %v331_v14 = vmul.f32 %v958_v13, %v329_v12 }
 0x176   : > { %v333_v16 = vsel %vm332_vm2, %v329_v12, %v331_v14 }
 0x177   : > { %v336_v17 = vsel %vm334_vm3, %v335_v15, %v333_v16 }
 0x178   : > { %959 = vrcp.f32 %v336_v17 }
 0x185   : > { %v960_v18 = vpop.eup %959 }
 0x186   : > { %v338_v20 = vmul.f32 %v960_v18, %v323_v4 }
 0x188   : > { %v345_v22 = vmul.f32 %v829_v19, %v338_v20 }
 0x18a   : > { %v352_v23 = vadd.f32 %v830_v21, %v345_v22 }
 0x18c   : > { %v353_v24 = vpack.c.bf16 %v352_v23, %v352_v23 }
 0x18e   : > { %861 = vmatmul.mubr.msk.bf16.vlgmr.msra.gmra.mxu0 %vm317_vm0, %v353_v24 }
 0x24e   : > { %v407_v25 = vpop.f32.mrf.mxu0 }
 0x24f   : > { %420 = vrot.lane.b32.xlu0 %v407_v25, %s1093_s8  ;;  %414 = vrot.lane.b32.xlu1 %v407_v25, %s1094_s12  ;;  %v423_v26 = vpack.c.bf16 %v407_v25, %v407_v25 }
 0x250   : > { %v862_v27 = vpop.f32.mrf.mxu0 }
 0x251   : > { %428 = vst.msk [vmem:[%s1269_s13] sm:$0xf] %vm427_vm4, %v423_v26 }
 0x252   : > { %v410_v28 = vpop.f32.mrf.mxu0 }
 0x253   : > { %417 = vrot.lane.b32.xlu1 %v407_v25, %s1095_s14 }
 0x254   : > { %v863_v29 = vpop.f32.mrf.mxu0 }
 0x257   : > { %444 = vrot.lane.b32.xlu1 %v423_v26, %s1096_s15 }
 0x258   : > { %v511_v44 = vld [vmem:[%s1269_s13] sm:$0xf] (%p1379_p1) }
 0x259   : > { %512 = vst [vmem:[%s494_s4] sm:$0xf] (%p1379_p1), %v511_v44 }
 0x25b   : > { %460 = vrot.lane.b32.xlu1 %v423_v26, %s1097_s18 }
 0x2c1   : > { %v421_v30 = vpop.permute.xlu0 %420  ;;  %v415_v31 = vpop.permute.xlu1 %414 }
 0x2c2   : > { %v426_v32 = vpack.c.bf16 %v421_v30, %v421_v30  ;;  %v424_v33 = vpack.c.bf16 %v415_v31, %v415_v31 }
 0x2c4   : > { %431 = vst.msk [vmem:[%s1269_s13 + $0xc] sm:$0xf] %vm427_vm4, %v426_v32  ;;  %429 = vst.msk [vmem:[%s1269_s13 + $0x4] sm:$0xf] %vm427_vm4, %v424_v33  ;;  %446 = vrot.lane.b32.xlu1 %v424_v33, %s1096_s15 }
 0x2c5   : > { %v418_v34 = vpop.permute.xlu1 %417 }
 0x2c6   : > { %v425_v35 = vpack.c.bf16 %v418_v34, %v418_v34 }
 0x2c8   : > { %430 = vst.msk [vmem:[%s1269_s13 + $0x8] sm:$0xf] %vm427_vm4, %v425_v35  ;;  %464 = vrot.lane.b32.xlu0 %v425_v35, %s1097_s18  ;;  %448 = vrot.lane.b32.xlu1 %v425_v35, %s1096_s15 }
 0x2c9   : > { %v445_v36 = vpop.permute.xlu1 %444 }
 0x2ca   : > { %456 = vst.msk [vmem:[%s1280_s10] sm:$0xf] %vm427_vm4, %v445_v36 }
 0x2cb   : > { %v513_v45 = vld [vmem:[%s1269_s13 + $0x4] sm:$0xf] (%p1379_p1)  ;;  %v517_v47 = vld [vmem:[%s1269_s13 + $0xc] sm:$0xf] (%p1379_p1) }
 0x2cc   : > { %450 = vrot.lane.b32.xlu1 %v426_v32, %s1096_s15  ;;  %514 = vst [vmem:[%s494_s4 + $0x8] sm:$0xf] (%p1379_p1), %v513_v45  ;;  %518 = vst [vmem:[%s494_s4 + $0x18] sm:$0xf] (%p1379_p1), %v517_v47 }
 0x2cd   : > { %v461_v37 = vpop.permute.xlu1 %460 }
 0x2ce   : > { %472 = vst.msk [vmem:[%s1285_s19] sm:$0xf] %vm427_vm4, %v461_v37 }
 0x2cf   : > { %v515_v46 = vld [vmem:[%s1269_s13 + $0x8] sm:$0xf] (%p1379_p1) }
 0x2d0   : > { %462 = vrot.lane.b32.xlu1 %v424_v33, %s1097_s18  ;;  %516 = vst [vmem:[%s494_s4 + $0x10] sm:$0xf] (%p1379_p1), %v515_v46 }
 0x2d4   : > { %466 = vrot.lane.b32.xlu1 %v426_v32, %s1097_s18 }
 0x336   : > { %v447_v38 = vpop.permute.xlu1 %446 }
 0x337   : > { %457 = vst.msk [vmem:[%s1280_s10 + $0x4] sm:$0xf] %vm427_vm4, %v447_v38 }
 0x33a   : > { %v465_v39 = vpop.permute.xlu0 %464  ;;  %v449_v40 = vpop.permute.xlu1 %448 }
 0x33b   : > { %474 = vst.msk [vmem:[%s1285_s19 + $0x8] sm:$0xf] %vm427_vm4, %v465_v39  ;;  %458 = vst.msk [vmem:[%s1280_s10 + $0x8] sm:$0xf] %vm427_vm4, %v449_v40 }
 0x33e   : > { %v451_v41 = vpop.permute.xlu1 %450 }
 0x33f   : > { %459 = vst.msk [vmem:[%s1280_s10 + $0xc] sm:$0xf] %vm427_vm4, %v451_v41 }
 0x342   : > { %v463_v42 = vpop.permute.xlu1 %462 }
 0x343   : > { %473 = vst.msk [vmem:[%s1285_s19 + $0x4] sm:$0xf] %vm427_vm4, %v463_v42  ;;  %490 = sbr.rel (!%p1379_p1) target bundleno = 840 (0x348), region = 48 }
 0x346   : > { %v467_v43 = vpop.permute.xlu1 %466 }
 0x347   : > { %475 = vst.msk [vmem:[%s1285_s19 + $0xc] sm:$0xf] %vm427_vm4, %v467_v43 }
 0x348 PF: > { %p1382_p4 = scmp.ne.s32.totalorder %s1376_s20, 0 }
 0x349   : > { %s1383_s24 = sld [smem:[#allocation11_spill]] (%p1382_p4)  ;;  %s843_s30 = sshll.u32 (%p1382_p4), %s1073_s25, 3  ;;  %v571_v48 = vld [vmem:[%s1280_s10] sm:$0xf] (%p1382_p4)  ;;  %v573_v49 = vld [vmem:[%s1280_s10 + $0x4] sm:$0xf] (%p1382_p4) }
 0x34a   : > { %550 = sbr.rel (!%p1382_p4) target bundleno = 852 (0x354), region = 89  ;;  %v575_v50 = vld [vmem:[%s1280_s10 + $0x8] sm:$0xf] (%p1382_p4)  ;;  %v577_v51 = vld [vmem:[%s1280_s10 + $0xc] sm:$0xf] (%p1382_p4)  ;;  %s1384_s14 = sld [smem:[#allocation15_spill]] (%p1382_p4) }
 0x34f   : > { %s552_s7 = sadd.s32 %s1383_s24, %s843_s30 }
 0x350   : > { %s844_s8 = sshll.u32 %s552_s7, 2 }
 0x351   : > { %s554_s15 = scalar_lea.vmem %s1384_s14, %s844_s8 }
 0x352   : > { %572 = vst [vmem:[%s554_s15] sm:$0xf] %v571_v48  ;;  %574 = vst [vmem:[%s554_s15 + $0x8] sm:$0xf] %v573_v49 }
 0x353   : > { %576 = vst [vmem:[%s554_s15 + $0x10] sm:$0xf] %v575_v50  ;;  %578 = vst [vmem:[%s554_s15 + $0x18] sm:$0xf] %v577_v51 }
 0x354 PF: > { %p1385_p5 = scmp.ne.s32.totalorder %s1376_s20, 0 }
 0x355   : > { %s1386_s18 = sld [smem:[#allocation11_spill]] (%p1385_p5)  ;;  %s845_s10 = sshll.u32 (%p1385_p5), %s1073_s25, 3  ;;  %v631_v52 = vld [vmem:[%s1285_s19] sm:$0xf] (%p1385_p5)  ;;  %v633_v53 = vld [vmem:[%s1285_s19 + $0x4] sm:$0xf] (%p1385_p5) }
 0x356   : > { %610 = sbr.rel (!%p1385_p5) target bundleno = 864 (0x360), region = 130  ;;  %v635_v54 = vld [vmem:[%s1285_s19 + $0x8] sm:$0xf] (%p1385_p5)  ;;  %v637_v55 = vld [vmem:[%s1285_s19 + $0xc] sm:$0xf] (%p1385_p5)  ;;  %s1387_s29 = sld [smem:[#allocation16_spill]] (%p1385_p5) }
 0x35b   : > { %s612_s9 = sadd.s32 %s1386_s18, %s845_s10 }
 0x35c   : > { %s846_s5 = sshll.u32 %s612_s9, 2 }
 0x35d   : > { %s614_s11 = scalar_lea.vmem %s1387_s29, %s846_s5 }
 0x35e   : > { %632 = vst [vmem:[%s614_s11] sm:$0xf] %v631_v52  ;;  %634 = vst [vmem:[%s614_s11 + $0x8] sm:$0xf] %v633_v53 }
 0x35f   : > { %636 = vst [vmem:[%s614_s11 + $0x10] sm:$0xf] %v635_v54  ;;  %638 = vst [vmem:[%s614_s11 + $0x18] sm:$0xf] %v637_v55 }
 0x360 PF: > { %s21_s28 = sadd.s32 1, %s1085_s28   ;;  %s1388_s20 = sld [smem:[#allocation12_spill]] }
 0x361   : > { %p18_p11 = scmp.ge.s32.totalorder %s21_s28, 6   ;;  %s1389_s21 = smov %s1061_s22 }
 0x362   : > { %s1390_s22 = smov %s1065_s23  ;;  %s1391_s23 = smov %s1224_s16 }
 0x363   : > { %s1392_s24 = smov %s1077_s26  ;;  %s1393_s25 = smov %s1081_s27 }
 0x364   : > { %s1395_s27 = smov %s1401_s17  ;;  %20 = sbr.rel (!%p18_p11) target bundleno = 11 (0xb), region = 227 }
 0x366   : > { %s1394_s26 = smov %s1388_s20 }
 0x369   :  { %694 = vsyncpa [#allocation3], 1 }
 0x36a   :  { %696 = vsyncpa [#allocation3 + $0x1], 1 }
 0x36b   :  { %697 = vsyncpa [#allocation5], 1 }

</bundles_post_ra>
